<compile_context>
chip_gen: v6e
topology: v6e:2x2x1
jax: 0.10.0
libtpu: 0.0.40
codegen_flags: <defaults>
</compile_context>

<pallas_src>
import math

import jax
import jax.numpy as jnp
from jax.experimental import pallas as pl
from jax.experimental.pallas import tpu as pltpu

_MIB = 1024 * 1024


def _round_up(n, m):
    return ((n + m - 1) // m) * m


def _feature_pad(n):
    # v6e/v7x MXU is 2x256^2: pad large feature dims to 256-granularity so N
    # tiles fill the array; keep 128 for small dims (e.g. C=8) to limit waste.
    return _round_up(n, 256) if n >= 256 else _round_up(n, 128)


def _vmem_cap_bytes():
    try:
        return int(pltpu.get_tpu_info().vmem_capacity_bytes)
    except Exception:
        return 64 * _MIB  # conservative default (v7x per-TC VMEM)


# ---------------------------------------------------------------------------
# Kernels
# ---------------------------------------------------------------------------

def _fc_softmax_kernel_resident(x_ref, w1t_ref, b1_ref, w2t_ref, b2_ref, o_ref):
    # fc1: (TB, Dp) @ (Dp, Hp) -> f32 accumulate, bias, ReLU.
    h = jnp.dot(x_ref[...], w1t_ref[...], preferred_element_type=jnp.float32)
    h = jnp.maximum(h + b1_ref[...], 0.0)

    # fc2 back on the bf16 MXU path; padded class columns carry a -1e30 bias.
    logits = jnp.dot(h.astype(w2t_ref.dtype), w2t_ref[...],
                     preferred_element_type=jnp.float32) + b2_ref[...]

    # Softmax over the lane axis; few live f32 temporaries, recip on the EUP.
    logits = logits - jnp.max(logits, axis=-1, keepdims=True)
    e = jnp.exp(logits)
    o_ref[...] = (e * pl.reciprocal(jnp.sum(e, axis=-1, keepdims=True),
                                    approx=True)).astype(o_ref.dtype)


def _fc_softmax_kernel_ktiled(x_ref, w1t_ref, b1_ref, w2t_ref, b2_ref, o_ref,
                              h_acc):
    # fc1 accumulated over the K (d_model) grid axis into an f32 VMEM scratch.
    k = pl.program_id(1)

    @pl.when(k == 0)
    def _():
        h_acc[...] = jnp.zeros_like(h_acc)

    h_acc[...] += jnp.dot(x_ref[...], w1t_ref[...],
                          preferred_element_type=jnp.float32)

    @pl.when(k == pl.num_programs(1) - 1)
    def _():
        h = jnp.maximum(h_acc[...] + b1_ref[...], 0.0)
        logits = jnp.dot(h.astype(w2t_ref.dtype), w2t_ref[...],
                         preferred_element_type=jnp.float32) + b2_ref[...]
        logits = logits - jnp.max(logits, axis=-1, keepdims=True)
        e = jnp.exp(logits)
        o_ref[...] = (e * pl.reciprocal(jnp.sum(e, axis=-1, keepdims=True),
                                        approx=True)).astype(o_ref.dtype)


# ---------------------------------------------------------------------------
# Wrappers
# ---------------------------------------------------------------------------

def pack_fc_softmax_params(w1, b1, w2, b2):
    """Pad/transpose/bf16-cast the weights ONCE (hoisted out of the call path).

    PyTorch layout in: w1 (H, D), b1 (H,), w2 (C, H), b2 (C,).
    """
    H, D = w1.shape
    C = w2.shape[0]
    assert b1.shape == (H,) and w2.shape == (C, H) and b2.shape == (C,)
    Dp, Hp, Cp = _feature_pad(D), _feature_pad(H), _feature_pad(C)

    w1t = jnp.zeros((Dp, Hp), jnp.bfloat16).at[:D, :H].set(w1.T.astype(jnp.bfloat16))
    b1p = jnp.zeros((1, Hp), jnp.float32).at[0, :H].set(b1.astype(jnp.float32))
    w2t = jnp.zeros((Hp, Cp), jnp.bfloat16).at[:H, :C].set(w2.T.astype(jnp.bfloat16))
    # Padded class columns get a -1e30 bias so they exp() to ~0 in the softmax.
    # (Valid only because the padded W2^T columns above are zero-filled.)
    b2p = jnp.full((1, Cp), -1e30, jnp.float32).at[0, :C].set(b2.astype(jnp.float32))
    return w1t, b1p, w2t, b2p, (D, H, C)


def fc_softmax_packed(x, packed, *, block_b=256, block_k=512,
                      out_dtype=jnp.bfloat16, force_k_tiled=False):
    """Fused fc1 -> ReLU -> fc2 -> softmax on pre-packed parameters."""
    w1t, b1p, w2t, b2p, (D, H, C) = packed
    B = x.shape[0]
    assert x.shape == (B, D)
    Dp, Hp = w1t.shape
    Cp = w2t.shape[1]

    # --- batch tile: big enough for the MXU, but keep the parallel grid >= 2
    # steps when the batch permits (v7x has 2 TensorCores sharding it).
    B8 = _round_up(B, 8)
    TB = min(block_b, B8)
    if B8 // TB < 2 and B8 >= 16:
        TB = _round_up(B8 // 2, 8)
    Bp = _round_up(B, TB)
    grid_i = Bp // TB

    out_itemsize = jnp.dtype(out_dtype).itemsize
    cap = _vmem_cap_bytes()
    headroom = 8 * _MIB

    # --- explicit VMEM accounting: pick resident-weight vs K-tiled path -----
    weight_bytes = 2 * Dp * Hp + 2 * Hp * Cp + 4 * (Hp + Cp)     # single-buffered
    f32_tmp = TB * Hp * 4 + 2 * TB * Cp * 4                      # h + logits + e
    resident_bytes = (weight_bytes
                      + 2 * TB * Dp * 2                          # x tile (2 bufs)
                      + 2 * TB * Cp * out_itemsize               # out tile (2 bufs)
                      + f32_tmp)
    use_k_tiled = force_k_tiled or resident_bytes > 0.6 * cap

    if use_k_tiled:
        TK = min(block_k, Dp)
        needed = (2 * Hp * Cp + 4 * (Hp + Cp)                    # resident W2^T + biases
                  + 2 * TB * TK * 2 + 2 * TK * Hp * 2            # x / W1^T tiles (2 bufs)
                  + 2 * TB * Cp * out_itemsize                   # out tile (2 bufs)
                  + TB * Hp * 4 + f32_tmp)                       # accumulator + epilogue
    else:
        TK = Dp
        needed = resident_bytes
    vmem_limit = int(min(max(needed + headroom, 16 * _MIB), 0.9 * cap))

    # --- pad / cast activations (skipped when already lane/tile aligned) ----
    if B == Bp and D == Dp:
        xp = x.astype(jnp.bfloat16)
    else:
        xp = jnp.zeros((Bp, Dp), jnp.bfloat16).at[:B, :D].set(x.astype(jnp.bfloat16))

    cost = pl.CostEstimate(
        flops=2 * Bp * Dp * Hp + 2 * Bp * Hp * Cp,
        transcendentals=Bp * Cp,
        bytes_accessed=(2 * Bp * Dp + 2 * Dp * Hp + 2 * Hp * Cp
                        + 4 * (Hp + Cp) + out_itemsize * Bp * Cp),
    )

    def _run(weight_mode):
        wkw = {} if weight_mode is None else {"pipeline_mode": weight_mode}
        if not use_k_tiled:
            grid = (grid_i,)
            in_specs = [
                pl.BlockSpec((TB, Dp), lambda i: (i, 0)),              # x tile
                pl.BlockSpec((Dp, Hp), lambda i: (0, 0), **wkw),       # W1^T resident
                pl.BlockSpec((1, Hp), lambda i: (0, 0), **wkw),        # b1
                pl.BlockSpec((Hp, Cp), lambda i: (0, 0), **wkw),       # W2^T resident
                pl.BlockSpec((1, Cp), lambda i: (0, 0), **wkw),        # b2 (-1e30 pad)
            ]
            out_specs = pl.BlockSpec((TB, Cp), lambda i: (i, 0))
            scratch_shapes = ()
            kernel = _fc_softmax_kernel_resident
            dims = ("parallel",)
        else:
            grid = (grid_i, Dp // TK)
            in_specs = [
                pl.BlockSpec((TB, TK), lambda i, k: (i, k)),           # x K-slab
                pl.BlockSpec((TK, Hp), lambda i, k: (k, 0)),           # W1^T K-slab
                pl.BlockSpec((1, Hp), lambda i, k: (0, 0), **wkw),     # b1
                pl.BlockSpec((Hp, Cp), lambda i, k: (0, 0), **wkw),    # W2^T resident
                pl.BlockSpec((1, Cp), lambda i, k: (0, 0), **wkw),     # b2 (-1e30 pad)
            ]
            out_specs = pl.BlockSpec((TB, Cp), lambda i, k: (i, 0))
            scratch_shapes = (pltpu.VMEM((TB, Hp), jnp.float32),)
            kernel = _fc_softmax_kernel_ktiled
            dims = ("parallel", "arbitrary")

        return pl.pallas_call(
            kernel,
            out_shape=jax.ShapeDtypeStruct((Bp, Cp), out_dtype),
            grid=grid,
            in_specs=in_specs,
            out_specs=out_specs,
            scratch_shapes=scratch_shapes,
            compiler_params=pltpu.CompilerParams(
                dimension_semantics=dims,
                vmem_limit_bytes=vmem_limit,
            ),
            cost_estimate=cost,
        )(xp, w1t, b1p, w2t, b2p)

    try:
        # Single-buffer the weight operands (their block index never changes).
        out = _run(pl.Buffered(1))
    except Exception:
        # Fallback if this JAX/Mosaic build rejects pipeline_mode=Buffered(1).
        out = _run(None)

    return out[:B, :C]


def fc_softmax(x, w1, b1, w2, b2, **kwargs):
    """One-shot convenience wrapper. For repeated calls, pack the params once
    with pack_fc_softmax_params() and call fc_softmax_packed() to avoid
    re-reading/re-writing the weights in HBM on every call."""
    return fc_softmax_packed(x, pack_fc_softmax_params(w1, b1, w2, b2), **kwargs)


# ---------------------------------------------------------------------------
# Test
# ---------------------------------------------------------------------------

def _init_linear_params(key, in_features, out_features):
    # Mimic PyTorch nn.Linear default init (bound = 1/sqrt(fan_in)).
    kw, kb = jax.random.split(key)
    bound = 1.0 / math.sqrt(in_features)
    w = jax.random.uniform(kw, (out_features, in_features), jnp.float32, -bound, bound)
    b = jax.random.uniform(kb, (out_features,), jnp.float32, -bound, bound)
    return w, b


def _reference(x, w1, b1, w2, b2):
    h = jnp.maximum(x @ w1.T + b1, 0.0)
    return jax.nn.softmax(h @ w2.T + b2, axis=-1)


if __name__ == "__main__":
    key = jax.random.PRNGKey(0)

    # --- small case matching the module (resident-weight path) --------------
    d_model, num_classes, batch = 32, 8, 4
    kx, k1, k2, key = jax.random.split(key, 4)
    x = jax.random.normal(kx, (batch, d_model), jnp.float32)
    w1, b1 = _init_linear_params(k1, d_model, d_model)
    w2, b2 = _init_linear_params(k2, d_model, num_classes)

    packed = pack_fc_softmax_params(w1, b1, w2, b2)
    out = jax.block_until_ready(fc_softmax_packed(x, packed))
    ref = _reference(x, w1, b1, w2, b2)
    out32 = out.astype(jnp.float32)
    assert out.shape == (batch, num_classes)
    assert jnp.allclose(jnp.sum(out32, axis=-1), 1.0, atol=1e-2)
    assert jnp.allclose(out32, ref, atol=3e-2), float(jnp.max(jnp.abs(out32 - ref)))

    # --- slightly bigger case exercising the K-tiled accumulator path -------
    d_model2, num_classes2, batch2 = 256, 8, 16
    kx2, k12, k22, key = jax.random.split(key, 4)
    x2 = jax.random.normal(kx2, (batch2, d_model2), jnp.float32)
    w12, b12 = _init_linear_params(k12, d_model2, d_model2)
    w22, b22 = _init_linear_params(k22, d_model2, num_classes2)

    out2 = jax.block_until_ready(
        fc_softmax(x2, w12, b12, w22, b22, block_k=128, force_k_tiled=True))
    ref2 = _reference(x2, w12, b12, w22, b22)
    out2_32 = out2.astype(jnp.float32)
    assert out2.shape == (batch2, num_classes2)
    assert jnp.allclose(jnp.sum(out2_32, axis=-1), 1.0, atol=1e-2)
    assert jnp.allclose(out2_32, ref2, atol=3e-2), float(jnp.max(jnp.abs(out2_32 - ref2)))

    print("KERNEL_OK")
</pallas_src>

<mosaic_0001>
module attributes {stable_mosaic.version = 11 : i64} {
  func.func @_fc_softmax_kernel_resident(%arg0: i32, %arg1: memref<8x128xbf16, #tpu.memory_space<vmem>>, %arg2: memref<128x128xbf16, #tpu.memory_space<vmem>>, %arg3: memref<1x128xf32, #tpu.memory_space<vmem>>, %arg4: memref<128x128xbf16, #tpu.memory_space<vmem>>, %arg5: memref<1x128xf32, #tpu.memory_space<vmem>>, %arg6: memref<8x128xbf16, #tpu.memory_space<vmem>>) attributes {dimension_semantics = [#tpu.dimension_semantics<parallel>], iteration_bounds = array<i64: 1>, scalar_prefetch = 0 : i64, scratch_operands = 0 : i64, tpu.core_type = #tpu.core_type<tc>, window_params = [{transform_indices = @transform_0, window_bounds = array<i64: 8, 128>}, {pipeline_mode = #tpu.pipeline_mode<synchronous>, transform_indices = @transform_1, window_bounds = array<i64: 128, 128>}, {pipeline_mode = #tpu.pipeline_mode<synchronous>, transform_indices = @transform_2, window_bounds = array<i64: 1, 128>}, {pipeline_mode = #tpu.pipeline_mode<synchronous>, transform_indices = @transform_3, window_bounds = array<i64: 128, 128>}, {pipeline_mode = #tpu.pipeline_mode<synchronous>, transform_indices = @transform_4, window_bounds = array<i64: 1, 128>}, {transform_indices = @transform_5, window_bounds = array<i64: 8, 128>}]} {
    %c0 = arith.constant 0 : index
    %c0_0 = arith.constant 0 : index
    %0 = vector.load %arg1[%c0, %c0_0] : memref<8x128xbf16, #tpu.memory_space<vmem>>, vector<8x128xbf16>
    %c0_1 = arith.constant 0 : index
    %c0_2 = arith.constant 0 : index
    %1 = vector.load %arg2[%c0_1, %c0_2] : memref<128x128xbf16, #tpu.memory_space<vmem>>, vector<128x128xbf16>
    %cst = arith.constant dense<0.000000e+00> : vector<8x128xf32>
    %2 = tpu.matmul %0, %1, %cst {dimension_numbers = #tpu.dot_dimension_numbers<[1], [0], [0], [1], [0, 0, 1, 1], [], []>} : vector<8x128xbf16>, vector<128x128xbf16>, vector<8x128xf32> -> vector<8x128xf32>
    %c0_3 = arith.constant 0 : index
    %c0_4 = arith.constant 0 : index
    %3 = vector.load %arg3[%c0_3, %c0_4] : memref<1x128xf32, #tpu.memory_space<vmem>>, vector<1x128xf32>
    %4 = vector.broadcast %3 : vector<1x128xf32> to vector<8x128xf32>
    %5 = arith.addf %2, %4 : vector<8x128xf32>
    %cst_5 = arith.constant 0.000000e+00 : f32
    %6 = vector.broadcast %cst_5 : f32 to vector<8x128xf32>
    %7 = arith.maximumf %5, %6 : vector<8x128xf32>
    %8 = arith.truncf %7 : vector<8x128xf32> to vector<8x128xbf16>
    %c0_6 = arith.constant 0 : index
    %c0_7 = arith.constant 0 : index
    %9 = vector.load %arg4[%c0_6, %c0_7] : memref<128x128xbf16, #tpu.memory_space<vmem>>, vector<128x128xbf16>
    %cst_8 = arith.constant dense<0.000000e+00> : vector<8x128xf32>
    %10 = tpu.matmul %8, %9, %cst_8 {dimension_numbers = #tpu.dot_dimension_numbers<[1], [0], [0], [1], [0, 0, 1, 1], [], []>} : vector<8x128xbf16>, vector<128x128xbf16>, vector<8x128xf32> -> vector<8x128xf32>
    %c0_9 = arith.constant 0 : index
    %c0_10 = arith.constant 0 : index
    %11 = vector.load %arg5[%c0_9, %c0_10] : memref<1x128xf32, #tpu.memory_space<vmem>>, vector<1x128xf32>
    %12 = vector.broadcast %11 : vector<1x128xf32> to vector<8x128xf32>
    %13 = arith.addf %10, %12 : vector<8x128xf32>
    %cst_11 = arith.constant dense<0xFF800000> : vector<8xf32>
    %14 = vector.multi_reduction <maximumf>, %13, %cst_11 [1] : vector<8x128xf32> to vector<8xf32>
    %15 = vector.shape_cast %14 : vector<8xf32> to vector<8x1xf32>
    %16 = vector.broadcast %15 : vector<8x1xf32> to vector<8x128xf32>
    %17 = arith.subf %13, %16 : vector<8x128xf32>
    %18 = math.exp %17 : vector<8x128xf32>
    %cst_12 = arith.constant dense<0.000000e+00> : vector<8xf32>
    %19 = vector.multi_reduction <add>, %18, %cst_12 [1] : vector<8x128xf32> to vector<8xf32>
    %20 = vector.shape_cast %19 : vector<8xf32> to vector<8x1xf32>
    %21 = tpu.reciprocal %20 {approx = true} : vector<8x1xf32> -> vector<8x1xf32>
    %22 = vector.broadcast %21 : vector<8x1xf32> to vector<8x128xf32>
    %23 = arith.mulf %18, %22 : vector<8x128xf32>
    %24 = arith.truncf %23 : vector<8x128xf32> to vector<8x128xbf16>
    %c0_13 = arith.constant 0 : index
    %c0_14 = arith.constant 0 : index
    %25 = vector.load %arg6[%c0_13, %c0_14] : memref<8x128xbf16, #tpu.memory_space<vmem>>, vector<8x128xbf16>
    tpu.vector_store %arg6[%c0_13, %c0_14], %24 {strides = array<i32>} : memref<8x128xbf16, #tpu.memory_space<vmem>>, vector<8x128xbf16>,
    return
  }
  func.func @transform_0(%arg0: i32) -> (i32, i32) {
    %c0_i32 = arith.constant 0 : i32
    %c0_i32_0 = arith.constant 0 : i32
    return %arg0, %c0_i32 : i32, i32
  }
  func.func @transform_1(%arg0: i32) -> (i32, i32) {
    %c0_i32 = arith.constant 0 : i32
    %c0_i32_0 = arith.constant 0 : i32
    %c0_i32_1 = arith.constant 0 : i32
    return %c0_i32, %c0_i32_0 : i32, i32
  }
  func.func @transform_2(%arg0: i32) -> (i32, i32) {
    %c0_i32 = arith.constant 0 : i32
    %c0_i32_0 = arith.constant 0 : i32
    %c0_i32_1 = arith.constant 0 : i32
    return %c0_i32, %c0_i32_0 : i32, i32
  }
  func.func @transform_3(%arg0: i32) -> (i32, i32) {
    %c0_i32 = arith.constant 0 : i32
    %c0_i32_0 = arith.constant 0 : i32
    %c0_i32_1 = arith.constant 0 : i32
    return %c0_i32, %c0_i32_0 : i32, i32
  }
  func.func @transform_4(%arg0: i32) -> (i32, i32) {
    %c0_i32 = arith.constant 0 : i32
    %c0_i32_0 = arith.constant 0 : i32
    %c0_i32_1 = arith.constant 0 : i32
    return %c0_i32, %c0_i32_0 : i32, i32
  }
  func.func @transform_5(%arg0: i32) -> (i32, i32) {
    %c0_i32 = arith.constant 0 : i32
    %c0_i32_0 = arith.constant 0 : i32
    return %arg0, %c0_i32 : i32, i32
  }
}

module attributes {stable_mosaic.version = 11 : i64} {
  func.func @_fc_softmax_kernel_resident(%arg0: i32, %arg1: memref<8x128xbf16, #tpu.memory_space<vmem>>, %arg2: memref<128x128xbf16, #tpu.memory_space<vmem>>, %arg3: memref<1x128xf32, #tpu.memory_space<vmem>>, %arg4: memref<128x128xbf16, #tpu.memory_space<vmem>>, %arg5: memref<1x128xf32, #tpu.memory_space<vmem>>, %arg6: memref<8x128xbf16, #tpu.memory_space<vmem>>) attributes {dimension_semantics = [#tpu.dimension_semantics<parallel>], iteration_bounds = array<i64: 1>, scalar_prefetch = 0 : i64, scratch_operands = 0 : i64, tpu.core_type = #tpu.core_type<tc>, window_params = [{transform_indices = @transform_0, window_bounds = array<i64: 8, 128>}, {pipeline_mode = #tpu.pipeline_mode<synchronous>, transform_indices = @transform_1, window_bounds = array<i64: 128, 128>}, {pipeline_mode = #tpu.pipeline_mode<synchronous>, transform_indices = @transform_2, window_bounds = array<i64: 1, 128>}, {pipeline_mode = #tpu.pipeline_mode<synchronous>, transform_indices = @transform_3, window_bounds = array<i64: 128, 128>}, {pipeline_mode = #tpu.pipeline_mode<synchronous>, transform_indices = @transform_4, window_bounds = array<i64: 1, 128>}, {transform_indices = @transform_5, window_bounds = array<i64: 8, 128>}]} {
    %c0 = arith.constant 0 : index
    %c0_0 = arith.constant 0 : index
    %0 = vector.load %arg1[%c0, %c0_0] : memref<8x128xbf16, #tpu.memory_space<vmem>>, vector<8x128xbf16>
    %c0_1 = arith.constant 0 : index
    %c0_2 = arith.constant 0 : index
    %1 = vector.load %arg2[%c0_1, %c0_2] : memref<128x128xbf16, #tpu.memory_space<vmem>>, vector<128x128xbf16>
    %cst = arith.constant dense<0.000000e+00> : vector<8x128xf32>
    %2 = tpu.matmul %0, %1, %cst {dimension_numbers = #tpu.dot_dimension_numbers<[1], [0], [0], [1], [0, 0, 1, 1], [], []>} : vector<8x128xbf16>, vector<128x128xbf16>, vector<8x128xf32> -> vector<8x128xf32>
    %c0_3 = arith.constant 0 : index
    %c0_4 = arith.constant 0 : index
    %3 = vector.load %arg3[%c0_3, %c0_4] : memref<1x128xf32, #tpu.memory_space<vmem>>, vector<1x128xf32>
    %4 = vector.broadcast %3 : vector<1x128xf32> to vector<8x128xf32>
    %5 = arith.addf %2, %4 : vector<8x128xf32>
    %cst_5 = arith.constant 0.000000e+00 : f32
    %6 = vector.broadcast %cst_5 : f32 to vector<8x128xf32>
    %7 = arith.maximumf %5, %6 : vector<8x128xf32>
    %8 = arith.truncf %7 : vector<8x128xf32> to vector<8x128xbf16>
    %c0_6 = arith.constant 0 : index
    %c0_7 = arith.constant 0 : index
    %9 = vector.load %arg4[%c0_6, %c0_7] : memref<128x128xbf16, #tpu.memory_space<vmem>>, vector<128x128xbf16>
    %cst_8 = arith.constant dense<0.000000e+00> : vector<8x128xf32>
    %10 = tpu.matmul %8, %9, %cst_8 {dimension_numbers = #tpu.dot_dimension_numbers<[1], [0], [0], [1], [0, 0, 1, 1], [], []>} : vector<8x128xbf16>, vector<128x128xbf16>, vector<8x128xf32> -> vector<8x128xf32>
    %c0_9 = arith.constant 0 : index
    %c0_10 = arith.constant 0 : index
    %11 = vector.load %arg5[%c0_9, %c0_10] : memref<1x128xf32, #tpu.memory_space<vmem>>, vector<1x128xf32>
    %12 = vector.broadcast %11 : vector<1x128xf32> to vector<8x128xf32>
    %13 = arith.addf %10, %12 : vector<8x128xf32>
    %cst_11 = arith.constant dense<0xFF800000> : vector<8xf32>
    %14 = vector.multi_reduction <maximumf>, %13, %cst_11 [1] : vector<8x128xf32> to vector<8xf32>
    %15 = vector.shape_cast %14 : vector<8xf32> to vector<8x1xf32>
    %16 = vector.broadcast %15 : vector<8x1xf32> to vector<8x128xf32>
    %17 = arith.subf %13, %16 : vector<8x128xf32>
    %18 = math.exp %17 : vector<8x128xf32>
    %cst_12 = arith.constant dense<0.000000e+00> : vector<8xf32>
    %19 = vector.multi_reduction <add>, %18, %cst_12 [1] : vector<8x128xf32> to vector<8xf32>
    %20 = vector.shape_cast %19 : vector<8xf32> to vector<8x1xf32>
    %21 = tpu.reciprocal %20 {approx = true} : vector<8x1xf32> -> vector<8x1xf32>
    %22 = vector.broadcast %21 : vector<8x1xf32> to vector<8x128xf32>
    %23 = arith.mulf %18, %22 : vector<8x128xf32>
    %24 = arith.truncf %23 : vector<8x128xf32> to vector<8x128xbf16>
    %c0_13 = arith.constant 0 : index
    %c0_14 = arith.constant 0 : index
    %25 = vector.load %arg6[%c0_13, %c0_14] : memref<8x128xbf16, #tpu.memory_space<vmem>>, vector<8x128xbf16>
    tpu.vector_store %arg6[%c0_13, %c0_14], %24 {strides = array<i32>} : memref<8x128xbf16, #tpu.memory_space<vmem>>, vector<8x128xbf16>,
    return
  }
  func.func @transform_0(%arg0: i32) -> (i32, i32) {
    %c0_i32 = arith.constant 0 : i32
    %c0_i32_0 = arith.constant 0 : i32
    return %arg0, %c0_i32 : i32, i32
  }
  func.func @transform_1(%arg0: i32) -> (i32, i32) {
    %c0_i32 = arith.constant 0 : i32
    %c0_i32_0 = arith.constant 0 : i32
    %c0_i32_1 = arith.constant 0 : i32
    return %c0_i32, %c0_i32_0 : i32, i32
  }
  func.func @transform_2(%arg0: i32) -> (i32, i32) {
    %c0_i32 = arith.constant 0 : i32
    %c0_i32_0 = arith.constant 0 : i32
    %c0_i32_1 = arith.constant 0 : i32
    return %c0_i32, %c0_i32_0 : i32, i32
  }
  func.func @transform_3(%arg0: i32) -> (i32, i32) {
    %c0_i32 = arith.constant 0 : i32
    %c0_i32_0 = arith.constant 0 : i32
    %c0_i32_1 = arith.constant 0 : i32
    return %c0_i32, %c0_i32_0 : i32, i32
  }
  func.func @transform_4(%arg0: i32) -> (i32, i32) {
    %c0_i32 = arith.constant 0 : i32
    %c0_i32_0 = arith.constant 0 : i32
    %c0_i32_1 = arith.constant 0 : i32
    return %c0_i32, %c0_i32_0 : i32, i32
  }
  func.func @transform_5(%arg0: i32) -> (i32, i32) {
    %c0_i32 = arith.constant 0 : i32
    %c0_i32_0 = arith.constant 0 : i32
    return %arg0, %c0_i32 : i32, i32
  }
}

</mosaic_0001>

<bundles_post_ra>
// kernel: tpu_custom_call.1
= control target key start
LH: loop header
LB: loop body
LE: loop exit
PB: predicated region body
PF: predicated region fallthrough
CT: control target
= control target key end

     0   :  { %10 = vsyncpa [#allocation3], 0  ;;  %s559_s0 = inlined_call_operand.hbm [shape: bf16[8,128], index: 0, kind: input, shape index: {}]   ;;  %s560_s1 = inlined_call_operand.hbm [shape: bf16[128,128], index: 1, kind: input, shape index: {}]   ;;  %s561_s2 = inlined_call_operand.vmem [shape: f32[1,128], index: 2, kind: input, shape index: {}]   ;;  %s562_s3 = inlined_call_operand.hbm [shape: bf16[128,128], index: 3, kind: input, shape index: {}]   ;;  %s563_s4 = inlined_call_operand.vmem [shape: f32[1,128], index: 4, kind: input, shape index: {}]   ;;  %s564_s5 = inlined_call_operand.hbm [shape: bf16[8,128], index: 5, kind: output, shape index: {}]  }
   0x1   :  { %11 = vsyncpa [#allocation6], 0 }
   0x2   :  { %12 = vsyncpa [#allocation4], 0  ;;  %s503_s18 = smov [#allocation5]  }
   0x3   :  { %s28_s19 = sshll.u32 %s503_s18, 4  ;;  %s29_s19 = int_to_ptr.vmem [resolvable:$true] %s28_s19 }
   0x4   :  { %s425_s20 = scalar_lea.vmem %s29_s19, 1024  ;;  %p430_p1 = scmp.lt.s32.totalorder %s29_s19, %s29_s19 }
   0x5   :  { %p426_p0 = scmp.ne.s32.totalorder %s29_s19, %s425_s20  ;;  %p431_p2 = scmp.lt.s32.totalorder %s425_s20, %s425_s20 }
   0x7   :  { %p432_p3 = por %p431_p2, %p430_p1 }
   0x9   :  { %p433_p4 = pnand %p432_p3, %p426_p0 }
   0xb   :  { %436 = shalt.err (!%p433_p4)
}
   0xc   :  { %s504_s21 = smov 64   ;;  %s505_s22 = smov 4  }
   0xd   :  { %34 = dma.hbm_to_vmem [thread:$0]  %s560_s1, 1024, %s29_s19, [#allocation6], %s504_s21, %s504_s21, %s505_s22  }
   0xe   :  { %s506_s25 = smov [#allocation2]   ;;  %s507_s27 = smov [#allocation7]  }
   0xf   :  { %s19_s26 = sshll.u32 %s506_s25, 4  ;;  %s42_s28 = sshll.u32 %s507_s27, 4  ;;  %s20_s26 = int_to_ptr.vmem [resolvable:$true] %s19_s26  ;;  %s43_s28 = int_to_ptr.vmem [resolvable:$true] %s42_s28 }
  0x10   :  { %s445_s29 = scalar_lea.vmem %s20_s26, 64  ;;  %p450_p6 = scmp.lt.s32.totalorder %s20_s26, %s20_s26 }
  0x11   :  { %p446_p5 = scmp.ne.s32.totalorder %s20_s26, %s445_s29  ;;  %p451_p7 = scmp.lt.s32.totalorder %s445_s29, %s445_s29 }
  0x13   :  { %p452_p8 = por %p451_p7, %p450_p6 }
  0x15   :  { %p453_p9 = pnand %p452_p8, %p446_p5 }
  0x17   :  { %456 = shalt.err (!%p453_p9)
}
  0x18   :  { %22 = dma.hbm_to_vmem [thread:$0]  %s559_s0, 64, %s20_s26, [#allocation3]  }
  0x19   :  { %s465_s7 = scalar_lea.vmem %s43_s28, 1024  ;;  %p470_p11 = scmp.lt.s32.totalorder %s43_s28, %s43_s28 }
  0x1a   :  { %p466_p10 = scmp.ne.s32.totalorder %s43_s28, %s465_s7  ;;  %p471_p12 = scmp.lt.s32.totalorder %s465_s7, %s465_s7 }
  0x1c   :  { %p472_p13 = por %p471_p12, %p470_p11 }
  0x1e   :  { %p473_p0 = pnand %p472_p13, %p466_p10 }
  0x20   :  { %476 = shalt.err (!%p473_p0)
}
  0x21   :  { %48 = dma.hbm_to_vmem [thread:$0]  %s562_s3, 1024, %s43_s28, [#allocation6], %s504_s21, %s504_s21, %s505_s22  }
  0x22   :  { %497 = dma.done.wait [#allocation3], 64  }
  0x23   :  { %498 = vsyncadd [#allocation3], 4294967232 }
  0x24   :  { %499 = dma.done.wait [#allocation6], 2048  }
  0x25   :  { %500 = vsyncadd [#allocation6], 4294965248  ;;  %v508_v0 = vmov 0.0   ;;  %vm509_vm0 = vmmov 0   ;;  %v397_v1 = vld [vmem:[#allocation5 + $0x38] sm:$0xff]   ;;  %v398_v2 = vld [vmem:[#allocation5 + $0x30] sm:$0xff]  }
  0x26   :  { %349 = vmatprep.subr.bf16.mxu0 %v508_v0  ;;  %365 = vmatprep.mubr.msk.bf16.mxu0 %vm509_vm0, %v508_v0  ;;  %v399_v3 = vld [vmem:[#allocation5 + $0x28] sm:$0xff]   ;;  %v405_v4 = vld [vmem:[#allocation7 + $0x38] sm:$0xff]   ;;  %v400_v5 = vld [vmem:[#allocation5 + $0x20] sm:$0xff]  }
  0x27   :  { %369 = vmatprep.subr.bf16.mxu1 %v508_v0  ;;  %385 = vmatprep.mubr.msk.bf16.mxu1 %vm509_vm0, %v508_v0  ;;  %v406_v6 = vld [vmem:[#allocation7 + $0x30] sm:$0xff]   ;;  %v401_v7 = vld [vmem:[#allocation5 + $0x18] sm:$0xff]   ;;  %v407_v8 = vld [vmem:[#allocation7 + $0x28] sm:$0xff]  }
  0x28   :  { %350 = vmatpush3.bf16.msra.mxu0 %v397_v1  ;;  %370 = vmatpush3.bf16.msra.mxu1 %v405_v4  ;;  %v402_v9 = vld [vmem:[#allocation5 + $0x10] sm:$0xff]   ;;  %v408_v10 = vld [vmem:[#allocation7 + $0x20] sm:$0xff]   ;;  %v403_v11 = vld [vmem:[#allocation5 + $0x8] sm:$0xff]  }
  0x29   :  { %351 = vmatprep.subr.bf16.mxu0 %v508_v0  ;;  %371 = vmatprep.subr.bf16.mxu1 %v508_v0  ;;  %v409_v12 = vld [vmem:[#allocation7 + $0x18] sm:$0xff]   ;;  %v404_v13 = vld [vmem:[#allocation5] sm:$0xff]   ;;  %v410_v14 = vld [vmem:[#allocation7 + $0x10] sm:$0xff]  }
  0x2a   :  { %v61_v15 = vld [vmem:[#allocation2] sm:$0xf]  ;;  %v411_v16 = vld [vmem:[#allocation7 + $0x8] sm:$0xff]   ;;  %v412_v17 = vld [vmem:[#allocation7] sm:$0xff]  }
  0x2b   :  { %v313_v18 = vld [vmem:[%s561_s2] ss:$0 sm:$0xff]  ;;  %s510_s2 = smov [#allocation8]  }
  0x2c   :  { %352 = vmatpush3.bf16.msra.mxu0 %v398_v2  ;;  %372 = vmatpush3.bf16.msra.mxu1 %v406_v6  ;;  %v322_v26 = vld [vmem:[%s563_s4] ss:$0 sm:$0xff]  ;;  %s303_s11 = sshll.u32 %s510_s2, 4  ;;  %s304_s11 = int_to_ptr.vmem [resolvable:$true] %s303_s11 }
  0x2d   :  { %353 = vmatprep.subr.bf16.mxu0 %v508_v0  ;;  %373 = vmatprep.subr.bf16.mxu1 %v508_v0  ;;  %s477_s4 = scalar_lea.vmem %s304_s11, 64  ;;  %p482_p2 = scmp.lt.s32.totalorder %s304_s11, %s304_s11 }
  0x2e   :  { %p478_p1 = scmp.ne.s32.totalorder %s304_s11, %s477_s4  ;;  %p483_p3 = scmp.lt.s32.totalorder %s477_s4, %s477_s4 }
  0x30   :  { %354 = vmatpush3.bf16.msra.mxu0 %v399_v3  ;;  %374 = vmatpush3.bf16.msra.mxu1 %v407_v8  ;;  %p484_p4 = por %p483_p3, %p482_p2 }
  0x31   :  { %355 = vmatprep.subr.bf16.mxu0 %v508_v0  ;;  %375 = vmatprep.subr.bf16.mxu1 %v508_v0 }
  0x32   :  { %p485_p5 = pnand %p484_p4, %p478_p1 }
  0x34   :  { %356 = vmatpush3.bf16.msra.mxu0 %v400_v5  ;;  %376 = vmatpush3.bf16.msra.mxu1 %v408_v10 }
  0x35   :  { %357 = vmatprep.subr.bf16.mxu0 %v508_v0  ;;  %377 = vmatprep.subr.bf16.mxu1 %v508_v0 }
  0x38   :  { %358 = vmatpush3.bf16.msra.mxu0 %v401_v7  ;;  %378 = vmatpush3.bf16.msra.mxu1 %v409_v12 }
  0x39   :  { %359 = vmatprep.subr.bf16.mxu0 %v508_v0  ;;  %379 = vmatprep.subr.bf16.mxu1 %v508_v0 }
  0x3c   :  { %360 = vmatpush3.bf16.msra.mxu0 %v402_v9  ;;  %380 = vmatpush3.bf16.msra.mxu1 %v410_v14 }
  0x3d   :  { %361 = vmatprep.subr.bf16.mxu0 %v508_v0  ;;  %381 = vmatprep.subr.bf16.mxu1 %v508_v0 }
  0x40   :  { %362 = vmatpush3.bf16.msra.mxu0 %v403_v11  ;;  %382 = vmatpush3.bf16.msra.mxu1 %v411_v16 }
  0x41   :  { %363 = vmatprep.subr.bf16.mxu0 %v508_v0  ;;  %383 = vmatprep.subr.bf16.mxu1 %v508_v0 }
  0x44   :  { %364 = vmatpush3.bf16.msra.mxu0 %v404_v13  ;;  %384 = vmatpush3.bf16.msra.mxu1 %v412_v17 }
  0x47   :  { %366 = vmatmul.mubr.bf16.vlgmr.msra.gmra.mxu0 %v61_v15 }
 0x107   :  { %v167_v19 = vpop.f32.mrf.mxu0 }
 0x108   :  { %v168_v20 = vadd.f32 %v313_v18, %v167_v19 }
 0x109   :  { %v367_v21 = vpop.f32.mrf.mxu0 }
 0x10a   :  { %v173_v22 = vmax.f32 %v168_v20, 0.0 }
 0x10b   :  { %v170_v23 = vpop.f32.mrf.mxu0 }
 0x10c   :  { %v174_v24 = vpack.c.bf16 %v173_v22, %v173_v22 }
 0x10d   :  { %v368_v25 = vpop.f32.mrf.mxu0 }
 0x10e   :  { %386 = vmatmul.mubr.bf16.vlgmr.msra.gmra.mxu1 %v174_v24 }
 0x1ce   :  { %v280_v27 = vpop.f32.mrf.mxu1 }
 0x1cf   :  { %v281_v28 = vadd.f32 %v322_v26, %v280_v27 }
 0x1d0   :  { %v387_v29 = vpop.f32.mrf.mxu1 }
 0x1d1   :  { %286 = vmax.xlane.f32.xlu0 %v281_v28 }
 0x1d2   :  { %v283_v30 = vpop.f32.mrf.mxu1 }
 0x1d4   :  { %v388_v31 = vpop.f32.mrf.mxu1 }
 0x25a   :  { %v287_v32 = vpop.xlane.xlu0 %286 }
 0x25b   :  { %v288_v33 = vsub.f32 %v281_v28, %v287_v32 }
 0x25d   :  { %v289_v34 = vmul.f32 1.442695, %v288_v33 }
 0x25f   :  { %413 = vpow2.f32 %v289_v34 }
 0x26c   :  { %v414_v35 = vpop.eup %413 }
 0x26d   :  { %291 = vadd.xlane.f32.xlu0 %v414_v35 }
 0x2f6   :  { %v292_v36 = vpop.xlane.xlu0 %291 }
 0x2f7   :  { %415 = vrcp.f32 %v292_v36 }
 0x304   :  { %v416_v37 = vpop.eup %415 }
 0x305   :  { %v294_v38 = vmul.f32 %v416_v37, %v414_v35 }
 0x307   :  { %v295_v39 = vpack.c.bf16 %v294_v38, %v294_v38 }
 0x309   :  { %296 = vst [vmem:[#allocation8] sm:$0xf] %v295_v39 }
 0x30a   :  { %488 = shalt.err (!%p485_p5)
}
 0x30b   :  { %306 = dma.vmem_to_hbm [thread:$0]  %s304_s11, 64, %s564_s5, [#allocation4]  }
 0x30c   :  { %501 = dma.done.wait [#allocation4], 64  }
 0x30d   :  { %502 = vsyncadd [#allocation4], 4294967232 }
 0x30e   :  { %310 = vsyncpa [#allocation3], 1 }
 0x30f   :  { %311 = vsyncpa [#allocation6], 1 }
 0x310   :  { %312 = vsyncpa [#allocation4], 1 }

// kernel: tpu_custom_call.1
= control target key start
LH: loop header
LB: loop body
LE: loop exit
PB: predicated region body
PF: predicated region fallthrough
CT: control target
= control target key end

     0   :  { %10 = vsyncpa [#allocation3], 0  ;;  %s559_s0 = inlined_call_operand.hbm [shape: bf16[8,128], index: 0, kind: input, shape index: {}]   ;;  %s560_s1 = inlined_call_operand.hbm [shape: bf16[128,128], index: 1, kind: input, shape index: {}]   ;;  %s561_s2 = inlined_call_operand.vmem [shape: f32[1,128], index: 2, kind: input, shape index: {}]   ;;  %s562_s3 = inlined_call_operand.hbm [shape: bf16[128,128], index: 3, kind: input, shape index: {}]   ;;  %s563_s4 = inlined_call_operand.vmem [shape: f32[1,128], index: 4, kind: input, shape index: {}]   ;;  %s564_s5 = inlined_call_operand.hbm [shape: bf16[8,128], index: 5, kind: output, shape index: {}]  }
   0x1   :  { %11 = vsyncpa [#allocation6], 0 }
   0x2   :  { %12 = vsyncpa [#allocation4], 0  ;;  %s503_s18 = smov [#allocation5]  }
   0x3   :  { %s28_s19 = sshll.u32 %s503_s18, 4  ;;  %s29_s19 = int_to_ptr.vmem [resolvable:$true] %s28_s19 }
   0x4   :  { %s425_s20 = scalar_lea.vmem %s29_s19, 1024  ;;  %p430_p1 = scmp.lt.s32.totalorder %s29_s19, %s29_s19 }
   0x5   :  { %p426_p0 = scmp.ne.s32.totalorder %s29_s19, %s425_s20  ;;  %p431_p2 = scmp.lt.s32.totalorder %s425_s20, %s425_s20 }
   0x7   :  { %p432_p3 = por %p431_p2, %p430_p1 }
   0x9   :  { %p433_p4 = pnand %p432_p3, %p426_p0 }
   0xb   :  { %436 = shalt.err (!%p433_p4)
}
   0xc   :  { %s504_s21 = smov 64   ;;  %s505_s22 = smov 4  }
   0xd   :  { %34 = dma.hbm_to_vmem [thread:$0]  %s560_s1, 1024, %s29_s19, [#allocation6], %s504_s21, %s504_s21, %s505_s22  }
   0xe   :  { %s506_s25 = smov [#allocation2]   ;;  %s507_s27 = smov [#allocation7]  }
   0xf   :  { %s19_s26 = sshll.u32 %s506_s25, 4  ;;  %s42_s28 = sshll.u32 %s507_s27, 4  ;;  %s20_s26 = int_to_ptr.vmem [resolvable:$true] %s19_s26  ;;  %s43_s28 = int_to_ptr.vmem [resolvable:$true] %s42_s28 }
  0x10   :  { %s445_s29 = scalar_lea.vmem %s20_s26, 64  ;;  %p450_p6 = scmp.lt.s32.totalorder %s20_s26, %s20_s26 }
  0x11   :  { %p446_p5 = scmp.ne.s32.totalorder %s20_s26, %s445_s29  ;;  %p451_p7 = scmp.lt.s32.totalorder %s445_s29, %s445_s29 }
  0x13   :  { %p452_p8 = por %p451_p7, %p450_p6 }
  0x15   :  { %p453_p9 = pnand %p452_p8, %p446_p5 }
  0x17   :  { %456 = shalt.err (!%p453_p9)
}
  0x18   :  { %22 = dma.hbm_to_vmem [thread:$0]  %s559_s0, 64, %s20_s26, [#allocation3]  }
  0x19   :  { %s465_s7 = scalar_lea.vmem %s43_s28, 1024  ;;  %p470_p11 = scmp.lt.s32.totalorder %s43_s28, %s43_s28 }
  0x1a   :  { %p466_p10 = scmp.ne.s32.totalorder %s43_s28, %s465_s7  ;;  %p471_p12 = scmp.lt.s32.totalorder %s465_s7, %s465_s7 }
  0x1c   :  { %p472_p13 = por %p471_p12, %p470_p11 }
  0x1e   :  { %p473_p0 = pnand %p472_p13, %p466_p10 }
  0x20   :  { %476 = shalt.err (!%p473_p0)
}
  0x21   :  { %48 = dma.hbm_to_vmem [thread:$0]  %s562_s3, 1024, %s43_s28, [#allocation6], %s504_s21, %s504_s21, %s505_s22  }
  0x22   :  { %497 = dma.done.wait [#allocation3], 64  }
  0x23   :  { %498 = vsyncadd [#allocation3], 4294967232 }
  0x24   :  { %499 = dma.done.wait [#allocation6], 2048  }
  0x25   :  { %500 = vsyncadd [#allocation6], 4294965248  ;;  %v508_v0 = vmov 0.0   ;;  %vm509_vm0 = vmmov 0   ;;  %v397_v1 = vld [vmem:[#allocation5 + $0x38] sm:$0xff]   ;;  %v398_v2 = vld [vmem:[#allocation5 + $0x30] sm:$0xff]  }
  0x26   :  { %349 = vmatprep.subr.bf16.mxu0 %v508_v0  ;;  %365 = vmatprep.mubr.msk.bf16.mxu0 %vm509_vm0, %v508_v0  ;;  %v399_v3 = vld [vmem:[#allocation5 + $0x28] sm:$0xff]   ;;  %v405_v4 = vld [vmem:[#allocation7 + $0x38] sm:$0xff]   ;;  %v400_v5 = vld [vmem:[#allocation5 + $0x20] sm:$0xff]  }
  0x27   :  { %369 = vmatprep.subr.bf16.mxu1 %v508_v0  ;;  %385 = vmatprep.mubr.msk.bf16.mxu1 %vm509_vm0, %v508_v0  ;;  %v406_v6 = vld [vmem:[#allocation7 + $0x30] sm:$0xff]   ;;  %v401_v7 = vld [vmem:[#allocation5 + $0x18] sm:$0xff]   ;;  %v407_v8 = vld [vmem:[#allocation7 + $0x28] sm:$0xff]  }
  0x28   :  { %350 = vmatpush3.bf16.msra.mxu0 %v397_v1  ;;  %370 = vmatpush3.bf16.msra.mxu1 %v405_v4  ;;  %v402_v9 = vld [vmem:[#allocation5 + $0x10] sm:$0xff]   ;;  %v408_v10 = vld [vmem:[#allocation7 + $0x20] sm:$0xff]   ;;  %v403_v11 = vld [vmem:[#allocation5 + $0x8] sm:$0xff]  }
  0x29   :  { %351 = vmatprep.subr.bf16.mxu0 %v508_v0  ;;  %371 = vmatprep.subr.bf16.mxu1 %v508_v0  ;;  %v409_v12 = vld [vmem:[#allocation7 + $0x18] sm:$0xff]   ;;  %v404_v13 = vld [vmem:[#allocation5] sm:$0xff]   ;;  %v410_v14 = vld [vmem:[#allocation7 + $0x10] sm:$0xff]  }
  0x2a   :  { %v61_v15 = vld [vmem:[#allocation2] sm:$0xf]  ;;  %v411_v16 = vld [vmem:[#allocation7 + $0x8] sm:$0xff]   ;;  %v412_v17 = vld [vmem:[#allocation7] sm:$0xff]  }
  0x2b   :  { %v313_v18 = vld [vmem:[%s561_s2] ss:$0 sm:$0xff]  ;;  %s510_s2 = smov [#allocation8]  }
  0x2c   :  { %352 = vmatpush3.bf16.msra.mxu0 %v398_v2  ;;  %372 = vmatpush3.bf16.msra.mxu1 %v406_v6  ;;  %v322_v26 = vld [vmem:[%s563_s4] ss:$0 sm:$0xff]  ;;  %s303_s11 = sshll.u32 %s510_s2, 4  ;;  %s304_s11 = int_to_ptr.vmem [resolvable:$true] %s303_s11 }
  0x2d   :  { %353 = vmatprep.subr.bf16.mxu0 %v508_v0  ;;  %373 = vmatprep.subr.bf16.mxu1 %v508_v0  ;;  %s477_s4 = scalar_lea.vmem %s304_s11, 64  ;;  %p482_p2 = scmp.lt.s32.totalorder %s304_s11, %s304_s11 }
  0x2e   :  { %p478_p1 = scmp.ne.s32.totalorder %s304_s11, %s477_s4  ;;  %p483_p3 = scmp.lt.s32.totalorder %s477_s4, %s477_s4 }
  0x30   :  { %354 = vmatpush3.bf16.msra.mxu0 %v399_v3  ;;  %374 = vmatpush3.bf16.msra.mxu1 %v407_v8  ;;  %p484_p4 = por %p483_p3, %p482_p2 }
  0x31   :  { %355 = vmatprep.subr.bf16.mxu0 %v508_v0  ;;  %375 = vmatprep.subr.bf16.mxu1 %v508_v0 }
  0x32   :  { %p485_p5 = pnand %p484_p4, %p478_p1 }
  0x34   :  { %356 = vmatpush3.bf16.msra.mxu0 %v400_v5  ;;  %376 = vmatpush3.bf16.msra.mxu1 %v408_v10 }
  0x35   :  { %357 = vmatprep.subr.bf16.mxu0 %v508_v0  ;;  %377 = vmatprep.subr.bf16.mxu1 %v508_v0 }
  0x38   :  { %358 = vmatpush3.bf16.msra.mxu0 %v401_v7  ;;  %378 = vmatpush3.bf16.msra.mxu1 %v409_v12 }
  0x39   :  { %359 = vmatprep.subr.bf16.mxu0 %v508_v0  ;;  %379 = vmatprep.subr.bf16.mxu1 %v508_v0 }
  0x3c   :  { %360 = vmatpush3.bf16.msra.mxu0 %v402_v9  ;;  %380 = vmatpush3.bf16.msra.mxu1 %v410_v14 }
  0x3d   :  { %361 = vmatprep.subr.bf16.mxu0 %v508_v0  ;;  %381 = vmatprep.subr.bf16.mxu1 %v508_v0 }
  0x40   :  { %362 = vmatpush3.bf16.msra.mxu0 %v403_v11  ;;  %382 = vmatpush3.bf16.msra.mxu1 %v411_v16 }
  0x41   :  { %363 = vmatprep.subr.bf16.mxu0 %v508_v0  ;;  %383 = vmatprep.subr.bf16.mxu1 %v508_v0 }
  0x44   :  { %364 = vmatpush3.bf16.msra.mxu0 %v404_v13  ;;  %384 = vmatpush3.bf16.msra.mxu1 %v412_v17 }
  0x47   :  { %366 = vmatmul.mubr.bf16.vlgmr.msra.gmra.mxu0 %v61_v15 }
 0x107   :  { %v167_v19 = vpop.f32.mrf.mxu0 }
 0x108   :  { %v168_v20 = vadd.f32 %v313_v18, %v167_v19 }
 0x109   :  { %v367_v21 = vpop.f32.mrf.mxu0 }
 0x10a   :  { %v173_v22 = vmax.f32 %v168_v20, 0.0 }
 0x10b   :  { %v170_v23 = vpop.f32.mrf.mxu0 }
 0x10c   :  { %v174_v24 = vpack.c.bf16 %v173_v22, %v173_v22 }
 0x10d   :  { %v368_v25 = vpop.f32.mrf.mxu0 }
 0x10e   :  { %386 = vmatmul.mubr.bf16.vlgmr.msra.gmra.mxu1 %v174_v24 }
 0x1ce   :  { %v280_v27 = vpop.f32.mrf.mxu1 }
 0x1cf   :  { %v281_v28 = vadd.f32 %v322_v26, %v280_v27 }
 0x1d0   :  { %v387_v29 = vpop.f32.mrf.mxu1 }
 0x1d1   :  { %286 = vmax.xlane.f32.xlu0 %v281_v28 }
 0x1d2   :  { %v283_v30 = vpop.f32.mrf.mxu1 }
 0x1d4   :  { %v388_v31 = vpop.f32.mrf.mxu1 }
 0x25a   :  { %v287_v32 = vpop.xlane.xlu0 %286 }
 0x25b   :  { %v288_v33 = vsub.f32 %v281_v28, %v287_v32 }
 0x25d   :  { %v289_v34 = vmul.f32 1.442695, %v288_v33 }
 0x25f   :  { %413 = vpow2.f32 %v289_v34 }
 0x26c   :  { %v414_v35 = vpop.eup %413 }
 0x26d   :  { %291 = vadd.xlane.f32.xlu0 %v414_v35 }
 0x2f6   :  { %v292_v36 = vpop.xlane.xlu0 %291 }
 0x2f7   :  { %415 = vrcp.f32 %v292_v36 }
 0x304   :  { %v416_v37 = vpop.eup %415 }
 0x305   :  { %v294_v38 = vmul.f32 %v416_v37, %v414_v35 }
 0x307   :  { %v295_v39 = vpack.c.bf16 %v294_v38, %v294_v38 }
 0x309   :  { %296 = vst [vmem:[#allocation8] sm:$0xf] %v295_v39 }
 0x30a   :  { %488 = shalt.err (!%p485_p5)
}
 0x30b   :  { %306 = dma.vmem_to_hbm [thread:$0]  %s304_s11, 64, %s564_s5, [#allocation4]  }
 0x30c   :  { %501 = dma.done.wait [#allocation4], 64  }
 0x30d   :  { %502 = vsyncadd [#allocation4], 4294967232 }
 0x30e   :  { %310 = vsyncpa [#allocation3], 1 }
 0x30f   :  { %311 = vsyncpa [#allocation6], 1 }
 0x310   :  { %312 = vsyncpa [#allocation4], 1 }

</bundles_post_ra>
